<compile_context>
chip_gen: v7x
topology: tpu7x:2x2x1
jax: 0.10.0
libtpu: 0.0.40
codegen_flags: <defaults>
</compile_context>

<pallas_src>
import math
import functools

import jax
import jax.numpy as jnp
from jax.experimental import pallas as pl
from jax.experimental.pallas import tpu as pltpu

LANE = 128          # TPU vreg lane width: pad feature dims to this
NEG = -1e30         # effectively -inf for padded class columns in log_softmax


# ---------------------------------------------------------------------------
# Fused whole-graph kernel (small graphs: everything resident in VMEM)
# ---------------------------------------------------------------------------
def _gcn_fused_kernel(x_ref, adj_ref, w1_ref, b1_ref, w2_ref, b2_ref, o_ref):
    adj = adj_ref[...]                                           # bf16 [N, N]

    # layer 1: h = relu(adj @ (x @ W1) + b1)
    s1 = jnp.dot(x_ref[...], w1_ref[...],
                 preferred_element_type=jnp.float32)             # [N, 128] f32
    h = jnp.dot(adj, s1.astype(adj.dtype),
                preferred_element_type=jnp.float32) + b1_ref[...]
    h = jnp.maximum(h, 0.0)
    # dropout(training=False) == identity

    # layer 2: z = adj @ (h @ W2) + b2
    s2 = jnp.dot(h, w2_ref[...], preferred_element_type=jnp.float32)
    z = jnp.dot(adj, s2.astype(adj.dtype),
                preferred_element_type=jnp.float32) + b2_ref[...]

    # log_softmax over classes; padded class columns were biased with -1e30
    # so they contribute exp(.) == 0 and never win the max.
    m = jnp.max(z, axis=1, keepdims=True)
    sh = z - m
    lse = jnp.log(jnp.sum(jnp.exp(sh), axis=1, keepdims=True))
    o_ref[...] = sh - lse                                        # lane-dense store


def _full_spec(shape):
    return pl.BlockSpec(shape, lambda: tuple(0 for _ in shape))


def _gcn_fused(x, adj_bf, w1p, b1p, w2p, b2p):
    N = x.shape[0]
    return pl.pallas_call(
        _gcn_fused_kernel,
        out_shape=jax.ShapeDtypeStruct((N, LANE), jnp.float32),
        in_specs=[_full_spec(x.shape), _full_spec(adj_bf.shape),
                  _full_spec(w1p.shape), _full_spec(b1p.shape),
                  _full_spec(w2p.shape), _full_spec(b2p.shape)],
        out_specs=_full_spec((N, LANE)),
    )(x, adj_bf, w1p, b1p, w2p, b2p)


# ---------------------------------------------------------------------------
# Tiled path (large graphs): row/col grid over adj, f32 accumulator in VMEM
# ---------------------------------------------------------------------------
def _conv1_kernel(adj_ref, x_ref, w1_ref, b1_ref, w2_ref, o_ref, acc_ref):
    # s2_block = relu( sum_k adj[i,k] @ (x[k] @ W1) + b1 ) @ W2      (bf16 out)
    # The x@W1 projection is tiny (F=32) so it is recomputed per row tile
    # instead of round-tripping s1 through HBM (and it removes one launch).
    k = pl.program_id(1)

    @pl.when(k == 0)
    def _():
        acc_ref[...] = jnp.zeros_like(acc_ref)

    s1_k = jnp.dot(x_ref[...], w1_ref[...],
                   preferred_element_type=jnp.float32)           # [tk, 128] f32
    acc_ref[...] += jnp.dot(adj_ref[...], s1_k.astype(adj_ref.dtype),
                            preferred_element_type=jnp.float32)

    @pl.when(k == pl.num_programs(1) - 1)
    def _():
        h = jnp.maximum(acc_ref[...] + b1_ref[...], 0.0)
        o_ref[...] = jnp.dot(h, w2_ref[...],
                             preferred_element_type=jnp.float32).astype(o_ref.dtype)


def _conv2_kernel(adj_ref, s_ref, b_ref, o_ref, acc_ref):
    # out_block = log_softmax( sum_k adj[i,k] @ s2[k] + b2 )
    k = pl.program_id(1)

    @pl.when(k == 0)
    def _():
        acc_ref[...] = jnp.zeros_like(acc_ref)

    acc_ref[...] += jnp.dot(adj_ref[...], s_ref[...],
                            preferred_element_type=jnp.float32)

    @pl.when(k == pl.num_programs(1) - 1)
    def _():
        z = acc_ref[...] + b_ref[...]
        m = jnp.max(z, axis=1, keepdims=True)
        sh = z - m
        lse = jnp.log(jnp.sum(jnp.exp(sh), axis=1, keepdims=True))
        o_ref[...] = sh - lse


def _conv1(adj_bf, x, w1p, b1p, w2p, tm, tk):
    N, F = x.shape
    return pl.pallas_call(
        _conv1_kernel,
        out_shape=jax.ShapeDtypeStruct((N, LANE), jnp.bfloat16),
        grid_spec=pltpu.PrefetchScalarGridSpec(
            num_scalar_prefetch=0,
            grid=(N // tm, N // tk),
            in_specs=[pl.BlockSpec((tm, tk), lambda i, k: (i, k)),
                      pl.BlockSpec((tk, F), lambda i, k: (k, 0)),
                      pl.BlockSpec((F, LANE), lambda i, k: (0, 0)),
                      pl.BlockSpec((1, LANE), lambda i, k: (0, 0)),
                      pl.BlockSpec((LANE, LANE), lambda i, k: (0, 0))],
            out_specs=pl.BlockSpec((tm, LANE), lambda i, k: (i, 0)),
            scratch_shapes=[pltpu.VMEM((tm, LANE), jnp.float32)]),
        compiler_params=pltpu.CompilerParams(
            dimension_semantics=("parallel", "arbitrary")),
    )(adj_bf, x, w1p, b1p, w2p)


def _conv2(adj_bf, s2, b2p, tm, tk):
    N = adj_bf.shape[0]
    return pl.pallas_call(
        _conv2_kernel,
        out_shape=jax.ShapeDtypeStruct((N, LANE), jnp.float32),
        grid_spec=pltpu.PrefetchScalarGridSpec(
            num_scalar_prefetch=0,
            grid=(N // tm, N // tk),
            in_specs=[pl.BlockSpec((tm, tk), lambda i, k: (i, k)),
                      pl.BlockSpec((tk, LANE), lambda i, k: (k, 0)),
                      pl.BlockSpec((1, LANE), lambda i, k: (0, 0))],
            out_specs=pl.BlockSpec((tm, LANE), lambda i, k: (i, 0)),
            scratch_shapes=[pltpu.VMEM((tm, LANE), jnp.float32)]),
        compiler_params=pltpu.CompilerParams(
            dimension_semantics=("parallel", "arbitrary")),
    )(adj_bf, s2, b2p)


def _gcn_tiled(x, adj_bf, w1p, b1p, w2p, b2p, tm, tk):
    s2 = _conv1(adj_bf, x, w1p, b1p, w2p, tm, tk)    # h & s1 never hit HBM
    return _conv2(adj_bf, s2, b2p, tm, tk)           # f32 [N, 128]


# ---------------------------------------------------------------------------
# Top-level forward
# ---------------------------------------------------------------------------
def _pad2d(w, rows, cols):
    r, c = w.shape
    return jnp.pad(w.astype(jnp.float32), ((0, rows - r), (0, cols - c)))


def _pad_bias(b, cols, fill):
    c = b.shape[0]
    return jnp.pad(b.reshape(1, c).astype(jnp.float32),
                   ((0, 0), (0, cols - c)), constant_values=fill)


def _pick_tile(n, target=512):
    for t in (target, 256, 128, 64, 32, 16, 8):
        if t <= n and n % t == 0:
            return t
    return n


@functools.partial(jax.jit, static_argnames=("force_path", "row_tile", "col_tile"))
def gcn_forward(x, adj, w1, b1, w2, b2, *,
                force_path=None, row_tile=None, col_tile=None):
    N, F = x.shape
    C = w2.shape[1]

    x = x.astype(jnp.float32)
    adj_bf = adj.astype(jnp.bfloat16)        # dominant operand: halve HBM bytes
    w1p = _pad2d(w1, F, LANE)                # [F, 128], zero padded
    b1p = _pad_bias(b1, LANE, 0.0)           # padded hidden cols -> relu(0) = 0
    w2p = _pad2d(w2, LANE, LANE)             # [128, 128], zero padded
    b2p = _pad_bias(b2, LANE, NEG)           # padded class cols -> exp ~ 0

    if force_path is None:
        # fused path keeps adj (bf16), x and a few [N,128] f32 temporaries in
        # VMEM; budget conservatively against the smallest scoped default.
        fused_vmem = 2 * N * N + 4 * N * F + 6 * 4 * N * LANE
        force_path = "fused" if fused_vmem < 12 * (1 << 20) else "tiled"

    if force_path == "fused":
        out = _gcn_fused(x, adj_bf, w1p, b1p, w2p, b2p)
    else:
        tm = row_tile if row_tile is not None else _pick_tile(N, 512)
        tk = col_tile if col_tile is not None else _pick_tile(N, 512)
        assert N % tm == 0 and N % tk == 0
        out = _gcn_tiled(x, adj_bf, w1p, b1p, w2p, b2p, tm, tk)

    return out[:, :C]                        # drop the lane padding


# ---------------------------------------------------------------------------
# Pure-JAX reference (same bf16-adj / f32-accumulate numerics)
# ---------------------------------------------------------------------------
def gcn_reference(x, adj, w1, b1, w2, b2):
    adj_bf = adj.astype(jnp.bfloat16)
    s1 = jnp.dot(x, w1, precision=jax.lax.Precision.HIGHEST)
    h = jax.nn.relu(jnp.dot(adj_bf, s1.astype(jnp.bfloat16),
                            preferred_element_type=jnp.float32) + b1)
    s2 = jnp.dot(h, w2, precision=jax.lax.Precision.HIGHEST)
    z = jnp.dot(adj_bf, s2.astype(jnp.bfloat16),
                preferred_element_type=jnp.float32) + b2
    return jax.nn.log_softmax(z, axis=1)


# ---------------------------------------------------------------------------
# Parameter / input construction (deterministic, mirrors reset_parameters)
# ---------------------------------------------------------------------------
def init_gc_params(key, in_features, out_features):
    stdv = 1.0 / math.sqrt(out_features)
    kw, kb = jax.random.split(key)
    w = jax.random.uniform(kw, (in_features, out_features),
                           minval=-stdv, maxval=stdv, dtype=jnp.float32)
    b = jax.random.uniform(kb, (out_features,),
                           minval=-stdv, maxval=stdv, dtype=jnp.float32)
    return w, b


def make_normalized_adj(key, n_nodes):
    """Random symmetric adjacency with self loops, D^-1/2 A D^-1/2 normalized."""
    a = (jax.random.uniform(key, (n_nodes, n_nodes)) > 0.9).astype(jnp.float32)
    a = jnp.maximum(a, a.T)
    a = a + jnp.eye(n_nodes, dtype=jnp.float32)
    a = jnp.minimum(a, 1.0)
    deg = jnp.sum(a, axis=1)
    d_inv_sqrt = 1.0 / jnp.sqrt(deg)
    return a * d_inv_sqrt[:, None] * d_inv_sqrt[None, :]


# ---------------------------------------------------------------------------
if __name__ == "__main__":
    NFEAT, NHID, NCLASS = 32, 16, 8          # hidden=16 as in args

    def build(n_nodes, key):
        kx, kadj, k1, k2 = jax.random.split(key, 4)
        x = jax.random.normal(kx, (n_nodes, NFEAT), dtype=jnp.float32)
        adj = make_normalized_adj(kadj, n_nodes)
        w1, b1 = init_gc_params(k1, NFEAT, NHID)
        w2, b2 = init_gc_params(k2, NHID, NCLASS)
        return x, adj, w1, b1, w2, b2

    key = jax.random.PRNGKey(0)
    k_small, k_big = jax.random.split(key)

    # 1) small graph -> fused single-kernel path
    args_small = build(128, k_small)
    out_fused = jax.block_until_ready(gcn_forward(*args_small))
    ref_small = gcn_reference(*args_small)
    assert out_fused.shape == (128, NCLASS)
    row_sums = jnp.sum(jnp.exp(out_fused), axis=1)
    assert bool(jnp.all(jnp.abs(row_sums - 1.0) < 1e-3))
    assert bool(jnp.max(jnp.abs(out_fused - ref_small)) < 5e-2)

    # 2) larger graph -> tiled grid path (exercises accumulator + reduction axis)
    args_big = build(512, k_big)
    out_tiled = jax.block_until_ready(
        gcn_forward(*args_big, force_path="tiled", row_tile=128, col_tile=128))
    ref_big = gcn_reference(*args_big)
    assert out_tiled.shape == (512, NCLASS)
    row_sums = jnp.sum(jnp.exp(out_tiled), axis=1)
    assert bool(jnp.all(jnp.abs(row_sums - 1.0) < 1e-3))
    assert bool(jnp.max(jnp.abs(out_tiled - ref_big)) < 5e-2)

    print("KERNEL_OK")
</pallas_src>

<mosaic_0001>
module attributes {stable_mosaic.version = 11 : i64} {
  func.func @_gcn_fused_kernel(%arg0: memref<128x32xf32, #tpu.memory_space<vmem>>, %arg1: memref<128x128xbf16, #tpu.memory_space<vmem>>, %arg2: memref<32x128xf32, #tpu.memory_space<vmem>>, %arg3: memref<1x128xf32, #tpu.memory_space<vmem>>, %arg4: memref<128x128xf32, #tpu.memory_space<vmem>>, %arg5: memref<1x128xf32, #tpu.memory_space<vmem>>, %arg6: memref<128x128xf32, #tpu.memory_space<vmem>>) attributes {dimension_semantics = [], scalar_prefetch = 0 : i64, scratch_operands = 0 : i64, tpu.core_type = #tpu.core_type<tc>} {
    %c0 = arith.constant 0 : index
    %c0_0 = arith.constant 0 : index
    %0 = vector.load %arg1[%c0, %c0_0] : memref<128x128xbf16, #tpu.memory_space<vmem>>, vector<128x128xbf16>
    %c0_1 = arith.constant 0 : index
    %c0_2 = arith.constant 0 : index
    %1 = vector.load %arg0[%c0_1, %c0_2] : memref<128x32xf32, #tpu.memory_space<vmem>>, vector<128x32xf32>
    %c0_3 = arith.constant 0 : index
    %c0_4 = arith.constant 0 : index
    %2 = vector.load %arg2[%c0_3, %c0_4] : memref<32x128xf32, #tpu.memory_space<vmem>>, vector<32x128xf32>
    %cst = arith.constant dense<0.000000e+00> : vector<128x128xf32>
    %3 = tpu.matmul %1, %2, %cst {dimension_numbers = #tpu.dot_dimension_numbers<[1], [0], [0], [1], [0, 0, 1, 1], [], []>} : vector<128x32xf32>, vector<32x128xf32>, vector<128x128xf32> -> vector<128x128xf32>
    %4 = arith.truncf %3 : vector<128x128xf32> to vector<128x128xbf16>
    %cst_5 = arith.constant dense<0.000000e+00> : vector<128x128xf32>
    %5 = tpu.matmul %0, %4, %cst_5 {dimension_numbers = #tpu.dot_dimension_numbers<[1], [0], [0], [1], [0, 0, 1, 1], [], []>} : vector<128x128xbf16>, vector<128x128xbf16>, vector<128x128xf32> -> vector<128x128xf32>
    %c0_6 = arith.constant 0 : index
    %c0_7 = arith.constant 0 : index
    %6 = vector.load %arg3[%c0_6, %c0_7] : memref<1x128xf32, #tpu.memory_space<vmem>>, vector<1x128xf32>
    %7 = vector.broadcast %6 : vector<1x128xf32> to vector<128x128xf32>
    %8 = arith.addf %5, %7 : vector<128x128xf32>
    %cst_8 = arith.constant 0.000000e+00 : f32
    %9 = vector.broadcast %cst_8 : f32 to vector<128x128xf32>
    %10 = arith.maximumf %8, %9 : vector<128x128xf32>
    %c0_9 = arith.constant 0 : index
    %c0_10 = arith.constant 0 : index
    %11 = vector.load %arg4[%c0_9, %c0_10] : memref<128x128xf32, #tpu.memory_space<vmem>>, vector<128x128xf32>
    %cst_11 = arith.constant dense<0.000000e+00> : vector<128x128xf32>
    %12 = tpu.matmul %10, %11, %cst_11 {dimension_numbers = #tpu.dot_dimension_numbers<[1], [0], [0], [1], [0, 0, 1, 1], [], []>} : vector<128x128xf32>, vector<128x128xf32>, vector<128x128xf32> -> vector<128x128xf32>
    %13 = arith.truncf %12 : vector<128x128xf32> to vector<128x128xbf16>
    %cst_12 = arith.constant dense<0.000000e+00> : vector<128x128xf32>
    %14 = tpu.matmul %0, %13, %cst_12 {dimension_numbers = #tpu.dot_dimension_numbers<[1], [0], [0], [1], [0, 0, 1, 1], [], []>} : vector<128x128xbf16>, vector<128x128xbf16>, vector<128x128xf32> -> vector<128x128xf32>
    %c0_13 = arith.constant 0 : index
    %c0_14 = arith.constant 0 : index
    %15 = vector.load %arg5[%c0_13, %c0_14] : memref<1x128xf32, #tpu.memory_space<vmem>>, vector<1x128xf32>
    %16 = vector.broadcast %15 : vector<1x128xf32> to vector<128x128xf32>
    %17 = arith.addf %14, %16 : vector<128x128xf32>
    %cst_15 = arith.constant dense<0xFF800000> : vector<128xf32>
    %18 = vector.multi_reduction <maximumf>, %17, %cst_15 [1] : vector<128x128xf32> to vector<128xf32>
    %19 = vector.shape_cast %18 : vector<128xf32> to vector<128x1xf32>
    %20 = vector.broadcast %19 : vector<128x1xf32> to vector<128x128xf32>
    %21 = arith.subf %17, %20 : vector<128x128xf32>
    %22 = math.exp %21 : vector<128x128xf32>
    %cst_16 = arith.constant dense<0.000000e+00> : vector<128xf32>
    %23 = vector.multi_reduction <add>, %22, %cst_16 [1] : vector<128x128xf32> to vector<128xf32>
    %24 = vector.shape_cast %23 : vector<128xf32> to vector<128x1xf32>
    %25 = math.log %24 : vector<128x1xf32>
    %26 = vector.broadcast %25 : vector<128x1xf32> to vector<128x128xf32>
    %27 = arith.subf %21, %26 : vector<128x128xf32>
    %c0_17 = arith.constant 0 : index
    %c0_18 = arith.constant 0 : index
    %28 = vector.load %arg6[%c0_17, %c0_18] : memref<128x128xf32, #tpu.memory_space<vmem>>, vector<128x128xf32>
    tpu.vector_store %arg6[%c0_17, %c0_18], %27 {strides = array<i32>} : memref<128x128xf32, #tpu.memory_space<vmem>>, vector<128x128xf32>,
    return
  }
}

</mosaic_0001>

<bundles_post_ra>
// kernel: gcn_forward.1
= control target key start
LH: loop header
LB: loop body
LE: loop exit
PB: predicated region body
PF: predicated region fallthrough
CT: control target
= control target key end

     0   :  { %vm60_vm0 = vcmask 261120   ;;  %s1618_s2 = inlined_call_operand.vmem [shape: f32[32,128], index: 2, kind: input, shape index: {}]   ;;  %s1619_s0 = inlined_call_operand.vmem [shape: f32[128,32], index: 0, kind: input, shape index: {}]   ;;  %s1620_s1 = inlined_call_operand.vmem [shape: bf16[128,128], index: 1, kind: input, shape index: {}]   ;;  %s1621_s4 = inlined_call_operand.vmem [shape: f32[128,128], index: 4, kind: input, shape index: {}]   ;;  %s1622_s3 = inlined_call_operand.vmem [shape: f32[1,128], index: 3, kind: input, shape index: {}]   ;;  %s1623_s5 = inlined_call_operand.vmem [shape: f32[1,128], index: 5, kind: input, shape index: {}]   ;;  %s1624_s6 = inlined_call_operand.vmem [shape: f32[128,128], index: 6, kind: output, shape index: {}]  }
   0x1   :  { %v56_v0 = vld [vmem:[%s1618_s2] sm:$0xff]  ;;  %v57_v1 = vld [vmem:[%s1618_s2 + $0x8] sm:$0xff]  ;;  %v58_v2 = vld [vmem:[%s1618_s2 + $0x10] sm:$0xff] }
   0x2   :  { %v1145_v3 = vpack.c.bf16 %v57_v1, %v56_v0  ;;  %v59_v4 = vld [vmem:[%s1618_s2 + $0x18] sm:$0xff]  ;;  %v40_v5 = vld [vmem:[%s1619_s0] sm:$0xff]  ;;  %v41_v7 = vld [vmem:[%s1619_s0 + $0x8] sm:$0xff] }
   0x3   :  { %v1149_v6 = vpack.c.bf16 %v59_v4, %v58_v2  ;;  %1001 = vmatprep.mubr.msk.f32.mxu0 %vm60_vm0, %v40_v5  ;;  %v42_v8 = vld [vmem:[%s1619_s0 + $0x10] sm:$0xff]  ;;  %v43_v9 = vld [vmem:[%s1619_s0 + $0x18] sm:$0xff]  ;;  %v44_v10 = vld [vmem:[%s1619_s0 + $0x20] sm:$0xff] }
   0x4   :  { %1146 = vmatprep.subr.bf16.mxu0 %v1145_v3  ;;  %v45_v11 = vld [vmem:[%s1619_s0 + $0x28] sm:$0xff]  ;;  %v46_v12 = vld [vmem:[%s1619_s0 + $0x30] sm:$0xff]  ;;  %v47_v13 = vld [vmem:[%s1619_s0 + $0x38] sm:$0xff] }
   0x5   :  { %1148 = vmatpush3.bf16.msra.mxu0 %v1145_v3  ;;  %v48_v14 = vld [vmem:[%s1619_s0 + $0x40] sm:$0xff]  ;;  %v49_v15 = vld [vmem:[%s1619_s0 + $0x48] sm:$0xff]  ;;  %v50_v16 = vld [vmem:[%s1619_s0 + $0x50] sm:$0xff] }
   0x6   :  { %1150 = vmatprep.subr.bf16.mxu0 %v1149_v6  ;;  %v51_v17 = vld [vmem:[%s1619_s0 + $0x58] sm:$0xff]  ;;  %v52_v18 = vld [vmem:[%s1619_s0 + $0x60] sm:$0xff]  ;;  %v53_v19 = vld [vmem:[%s1619_s0 + $0x68] sm:$0xff] }
   0x7   :  { %v54_v20 = vld [vmem:[%s1619_s0 + $0x70] sm:$0xff]  ;;  %v55_v21 = vld [vmem:[%s1619_s0 + $0x78] sm:$0xff]  ;;  %v1387_v22 = vld [vmem:[%s1620_s1] sm:$0xff]  }
   0x8   :  { %1041 = vmatprep.mubr.bf16.mxu1 %v1387_v22  ;;  %v430_v23 = vld [vmem:[%s1621_s4] sm:$0xff]  ;;  %v431_v24 = vld [vmem:[%s1621_s4 + $0x8] sm:$0xff]  ;;  %v432_v25 = vld [vmem:[%s1621_s4 + $0x10] sm:$0xff] }
   0x9   :  { %1152 = vmatpush3.bf16.msra.mxu0 %v1149_v6  ;;  %v1153_v26 = vpack.c.bf16 %v431_v24, %v430_v23  ;;  %v433_v27 = vld [vmem:[%s1621_s4 + $0x18] sm:$0xff]  ;;  %v434_v29 = vld [vmem:[%s1621_s4 + $0x20] sm:$0xff]  ;;  %v435_v30 = vld [vmem:[%s1621_s4 + $0x28] sm:$0xff] }
   0xa   :  { %v1157_v28 = vpack.c.bf16 %v433_v27, %v432_v25  ;;  %v1161_v31 = vpack.c.bf16 %v435_v30, %v434_v29  ;;  %v436_v32 = vld [vmem:[%s1621_s4 + $0x30] sm:$0xff]  ;;  %v437_v33 = vld [vmem:[%s1621_s4 + $0x38] sm:$0xff]  ;;  %v438_v35 = vld [vmem:[%s1621_s4 + $0x40] sm:$0xff] }
   0xb   :  { %1154 = vmatprep.subr.bf16.mxu0 %v1153_v26  ;;  %v1165_v34 = vpack.c.bf16 %v437_v33, %v436_v32  ;;  %v439_v36 = vld [vmem:[%s1621_s4 + $0x48] sm:$0xff]  ;;  %v440_v38 = vld [vmem:[%s1621_s4 + $0x50] sm:$0xff]  ;;  %v441_v39 = vld [vmem:[%s1621_s4 + $0x58] sm:$0xff] }
   0xc   :  { %1002 = vmatmul.mubr.msk.f32.vlgmr.msra.gmra.mrb[0].mxu0 %vm60_vm0, %v41_v7  ;;  %v1169_v37 = vpack.c.bf16 %v439_v36, %v438_v35  ;;  %v1173_v40 = vpack.c.bf16 %v441_v39, %v440_v38  ;;  %v1429_v1 = vld [vmem:[%s1620_s1 + $0x8] sm:$0xff]   ;;  %v1203_v2 = vld [vmem:[%s1620_s1 + $0x10] sm:$0xff]   ;;  %v1438_v3 = vld [vmem:[%s1620_s1 + $0x18] sm:$0xff]  }
   0xd   :  { %1004 = vmatprep.mubr.msk.f32.mxu0 %vm60_vm0, %v42_v8  ;;  %1156 = vmatpush3.bf16.msra.mxu0 %v1153_v26  ;;  %v1443_v4 = vld [vmem:[%s1620_s1 + $0x20] sm:$0xff]   ;;  %v1450_v5 = vld [vmem:[%s1620_s1 + $0x28] sm:$0xff]   ;;  %v1455_v6 = vld [vmem:[%s1620_s1 + $0x30] sm:$0xff]  }
   0xe   :  { %1158 = vmatprep.subr.bf16.mxu0 %v1157_v28  ;;  %v1462_v7 = vld [vmem:[%s1620_s1 + $0x38] sm:$0xff]   ;;  %v442_v8 = vld [vmem:[%s1621_s4 + $0x60] sm:$0xff] }
  0x10   :  { %1005 = vmatmul.mubr.msk.f32.gmra.mrb[2].mxu0 %vm60_vm0, %v43_v9  ;;  %v443_v9 = vld [vmem:[%s1621_s4 + $0x68] sm:$0xff] }
  0x11   :  { %1007 = vmatprep.mubr.msk.f32.mxu0 %vm60_vm0, %v44_v10  ;;  %1160 = vmatpush3.bf16.msra.mxu0 %v1157_v28  ;;  %v1177_v10 = vpack.c.bf16 %v443_v9, %v442_v8 }
  0x12   :  { %1162 = vmatprep.subr.bf16.mxu0 %v1161_v31 }
  0x14   :  { %1008 = vmatmul.mubr.msk.f32.gmra.mrb[4].mxu0 %vm60_vm0, %v45_v11  ;;  %v444_v11 = vld [vmem:[%s1621_s4 + $0x70] sm:$0xff] }
  0x15   :  { %1010 = vmatprep.mubr.msk.f32.mxu0 %vm60_vm0, %v46_v12  ;;  %1164 = vmatpush3.bf16.msra.mxu0 %v1161_v31  ;;  %v445_v12 = vld [vmem:[%s1621_s4 + $0x78] sm:$0xff] }
  0x16   :  { %1166 = vmatprep.subr.bf16.mxu0 %v1165_v34 }
  0x18   :  { %1011 = vmatmul.mubr.msk.f32.gmra.mrb[6].mxu0 %vm60_vm0, %v47_v13  ;;  %v1181_v13 = vpack.c.bf16 %v445_v12, %v444_v11 }
  0x19   :  { %1013 = vmatprep.mubr.msk.f32.mxu0 %vm60_vm0, %v48_v14  ;;  %1168 = vmatpush3.bf16.msra.mxu0 %v1165_v34  ;;  %v899_v14 = vld [vmem:[%s1622_s3] ss:$0 sm:$0xff] }
  0x1a   :  { %1170 = vmatprep.subr.bf16.mxu0 %v1169_v37 }
  0x1c   :  { %1014 = vmatmul.mubr.msk.f32.gmra.mrb[8].mxu0 %vm60_vm0, %v49_v15 }
  0x1d   :  { %1016 = vmatprep.mubr.msk.f32.mxu0 %vm60_vm0, %v50_v16  ;;  %1172 = vmatpush3.bf16.msra.mxu0 %v1169_v37 }
  0x1e   :  { %1174 = vmatprep.subr.bf16.mxu0 %v1173_v40 }
  0x20   :  { %1017 = vmatmul.mubr.msk.f32.gmra.mrb[10].mxu0 %vm60_vm0, %v51_v17 }
  0x21   :  { %1019 = vmatprep.mubr.msk.f32.mxu0 %vm60_vm0, %v52_v18  ;;  %1176 = vmatpush3.bf16.msra.mxu0 %v1173_v40 }
  0x22   :  { %1178 = vmatprep.subr.bf16.mxu0 %v1177_v10 }
  0x24   :  { %1020 = vmatmul.mubr.msk.f32.gmra.mrb[12].mxu0 %vm60_vm0, %v53_v19 }
  0x25   :  { %1022 = vmatprep.mubr.msk.f32.mxu0 %vm60_vm0, %v54_v20  ;;  %1180 = vmatpush3.bf16.msra.mxu0 %v1177_v10 }
  0x26   :  { %1182 = vmatprep.subr.bf16.mxu0 %v1181_v13 }
  0x28   :  { %1023 = vmatmul.mubr.msk.f32.gmra.mrb[14].mxu0 %vm60_vm0, %v55_v21 }
  0x29   :  { %1184 = vmatpush3.bf16.msra.mxu0 %v1181_v13 }
  0xdf   :  { %v1003_v41 = vpop.f32.mrb[0].mxu0 }
  0xe0   :  { %v175_v42 = vpop.f32.mrb[1].mxu0 }
  0xe1   :  { %v254_v43 = vpack.c.bf16 %v1003_v41, %v175_v42 }
  0xe3   :  { %v1006_v44 = vpop.f32.mrb[2].mxu0  ;;  %1025 = vmatprep.subr.bf16.mxu1 %v254_v43 }
  0xe4   :  { %v185_v45 = vpop.f32.mrb[3].mxu0  ;;  %1026 = vmatpush3.bf16.msra.mxu1 %v254_v43 }
  0xe5   :  { %v255_v46 = vpack.c.bf16 %v1006_v44, %v185_v45 }
  0xe7   :  { %v1009_v47 = vpop.f32.mrb[4].mxu0  ;;  %1027 = vmatprep.subr.bf16.mxu1 %v255_v46 }
  0xe8   :  { %v195_v48 = vpop.f32.mrb[5].mxu0  ;;  %1028 = vmatpush3.bf16.msra.mxu1 %v255_v46 }
  0xe9   :  { %v256_v49 = vpack.c.bf16 %v1009_v47, %v195_v48 }
  0xeb   :  { %v1012_v50 = vpop.f32.mrb[6].mxu0  ;;  %1029 = vmatprep.subr.bf16.mxu1 %v256_v49 }
  0xec   :  { %v205_v51 = vpop.f32.mrb[7].mxu0  ;;  %1030 = vmatpush3.bf16.msra.mxu1 %v256_v49 }
  0xed   :  { %v257_v52 = vpack.c.bf16 %v1012_v50, %v205_v51 }
  0xef   :  { %v1015_v53 = vpop.f32.mrb[8].mxu0  ;;  %1031 = vmatprep.subr.bf16.mxu1 %v257_v52 }
  0xf0   :  { %v215_v54 = vpop.f32.mrb[9].mxu0  ;;  %1032 = vmatpush3.bf16.msra.mxu1 %v257_v52 }
  0xf1   :  { %v258_v55 = vpack.c.bf16 %v1015_v53, %v215_v54 }
  0xf3   :  { %v1018_v56 = vpop.f32.mrb[10].mxu0  ;;  %1033 = vmatprep.subr.bf16.mxu1 %v258_v55 }
  0xf4   :  { %v225_v57 = vpop.f32.mrb[11].mxu0  ;;  %1034 = vmatpush3.bf16.msra.mxu1 %v258_v55 }
  0xf5   :  { %v259_v58 = vpack.c.bf16 %v1018_v56, %v225_v57 }
  0xf7   :  { %v1021_v59 = vpop.f32.mrb[12].mxu0  ;;  %1035 = vmatprep.subr.bf16.mxu1 %v259_v58 }
  0xf8   :  { %v235_v60 = vpop.f32.mrb[13].mxu0  ;;  %1036 = vmatpush3.bf16.msra.mxu1 %v259_v58 }
  0xf9   :  { %v260_v61 = vpack.c.bf16 %v1021_v59, %v235_v60 }
  0xfb   :  { %v1024_v62 = vpop.f32.mrb[14].mxu0  ;;  %1037 = vmatprep.subr.bf16.mxu1 %v260_v61 }
  0xfc   :  { %v245_v63 = vpop.f32.mrb[15].mxu0  ;;  %1038 = vmatpush3.bf16.msra.mxu1 %v260_v61 }
  0xfd   :  { %v261_v0 = vpack.c.bf16 %v1024_v62, %v245_v63 }
  0xff   :  { %1039 = vmatprep.subr.bf16.mxu1 %v261_v0 }
 0x100   :  { %1040 = vmatpush3.bf16.msra.mxu1 %v261_v0 }
 0x103   :  { %1042 = vmatmul.mubr.bf16.vlgmr.msra.gmra.mrb[0].mxu1 %v1429_v1 }
 0x104   :  { %1045 = vmatprep.mubr.bf16.mxu1 %v1203_v2 }
 0x10b   :  { %1046 = vmatmul.mubr.bf16.gmra.mrb[4].mxu1 %v1438_v3 }
 0x10c   :  { %1049 = vmatprep.mubr.bf16.mxu1 %v1443_v4 }
 0x113   :  { %1050 = vmatmul.mubr.bf16.gmra.mrb[8].mxu1 %v1450_v5 }
 0x114   :  { %1053 = vmatprep.mubr.bf16.mxu1 %v1455_v6 }
 0x11b   :  { %1054 = vmatmul.mubr.bf16.gmra.mrb[12].mxu1 %v1462_v7 }
 0x11c   :  { %1133 = vmatprep.mubr.bf16.mxu1 %v1203_v2 }
 0x1d6   :  { %v1043_v15 = vpop.f32.mrb[0].mxu1 }
 0x1d7   :  { %v351_v16 = vpop.f32.mrb[1].mxu1  ;;  %v360_v19 = vadd.f32 %v1043_v15, %v899_v14 }
 0x1d8   :  { %v352_v17 = vadd.f32 %v899_v14, %v351_v16  ;;  %v1044_v18 = vpop.f32.mrb[2].mxu1 }
 0x1d9   :  { %v354_v20 = vpop.f32.mrb[3].mxu1  ;;  %v363_v24 = vadd.f32 %v1044_v18, %v899_v14  ;;  %v416_v26 = vmax.f32 %v360_v19, 0.0 }
 0x1da   :  { %v414_v21 = vmax.f32 %v352_v17, 0.0  ;;  %v355_v23 = vadd.f32 %v899_v14, %v354_v20 }
 0x1db   :  { %v417_v29 = vmax.f32 %v363_v24, 0.0 }
 0x1dc   :  { %v415_v25 = vmax.f32 %v355_v23, 0.0  ;;  %1089 = vmatprep.mubr.f32.mxu0 %v414_v21 }
 0x1de   :  { %v1047_v27 = vpop.f32.mrb[4].mxu1  ;;  %1090 = vmatmul.mubr.f32.vlgmr.msra.gmra.mrb[16].mxu0 %v415_v25 }
 0x1df   :  { %v367_v28 = vpop.f32.mrb[5].mxu1  ;;  %1092 = vmatprep.mubr.f32.mxu0 %v416_v26  ;;  %v376_v32 = vadd.f32 %v1047_v27, %v899_v14 }
 0x1e0   :  { %v368_v30 = vadd.f32 %v899_v14, %v367_v28  ;;  %v1048_v31 = vpop.f32.mrb[6].mxu1 }
 0x1e1   :  { %v370_v33 = vpop.f32.mrb[7].mxu1  ;;  %v379_v36 = vadd.f32 %v1048_v31, %v899_v14  ;;  %v420_v38 = vmax.f32 %v376_v32, 0.0 }
 0x1e2   :  { %v418_v34 = vmax.f32 %v368_v30, 0.0  ;;  %v371_v35 = vadd.f32 %v899_v14, %v370_v33  ;;  %1093 = vmatmul.mubr.f32.gmra.mrb[18].mxu0 %v417_v29  ;;  %v908_v30 = vld [vmem:[%s1623_s5] ss:$0 sm:$0xff] }
 0x1e3   :  { %v421_v41 = vmax.f32 %v379_v36, 0.0 }
 0x1e4   :  { %v419_v37 = vmax.f32 %v371_v35, 0.0  ;;  %1095 = vmatprep.mubr.f32.mxu0 %v418_v34 }
 0x1e6   :  { %v1051_v39 = vpop.f32.mrb[8].mxu1  ;;  %1096 = vmatmul.mubr.f32.gmra.mrb[20].mxu0 %v419_v37 }
 0x1e7   :  { %v383_v40 = vpop.f32.mrb[9].mxu1  ;;  %1098 = vmatprep.mubr.f32.mxu0 %v420_v38  ;;  %v392_v44 = vadd.f32 %v1051_v39, %v899_v14 }
 0x1e8   :  { %v384_v42 = vadd.f32 %v899_v14, %v383_v40  ;;  %v1052_v43 = vpop.f32.mrb[10].mxu1 }
 0x1e9   :  { %v386_v45 = vpop.f32.mrb[11].mxu1  ;;  %v395_v48 = vadd.f32 %v1052_v43, %v899_v14  ;;  %v424_v50 = vmax.f32 %v392_v44, 0.0 }
 0x1ea   :  { %v422_v46 = vmax.f32 %v384_v42, 0.0  ;;  %v387_v47 = vadd.f32 %v899_v14, %v386_v45  ;;  %1099 = vmatmul.mubr.f32.gmra.mrb[22].mxu0 %v421_v41 }
 0x1eb   :  { %v425_v53 = vmax.f32 %v395_v48, 0.0 }
 0x1ec   :  { %v423_v49 = vmax.f32 %v387_v47, 0.0  ;;  %1101 = vmatprep.mubr.f32.mxu0 %v422_v46 }
 0x1ee   :  { %v1055_v51 = vpop.f32.mrb[12].mxu1  ;;  %1102 = vmatmul.mubr.f32.gmra.mrb[24].mxu0 %v423_v49 }
 0x1ef   :  { %v399_v52 = vpop.f32.mrb[13].mxu1  ;;  %1104 = vmatprep.mubr.f32.mxu0 %v424_v50  ;;  %v408_v56 = vadd.f32 %v1055_v51, %v899_v14 }
 0x1f0   :  { %v400_v54 = vadd.f32 %v899_v14, %v399_v52  ;;  %v1056_v55 = vpop.f32.mrb[14].mxu1 }
 0x1f1   :  { %v402_v57 = vpop.f32.mrb[15].mxu1  ;;  %v411_v60 = vadd.f32 %v1056_v55, %v899_v14  ;;  %v428_v62 = vmax.f32 %v408_v56, 0.0 }
 0x1f2   :  { %v426_v58 = vmax.f32 %v400_v54, 0.0  ;;  %v403_v59 = vadd.f32 %v899_v14, %v402_v57  ;;  %1105 = vmatmul.mubr.f32.gmra.mrb[26].mxu0 %v425_v53 }
 0x1f3   :  { %v429_v63 = vmax.f32 %v411_v60, 0.0 }
 0x1f4   :  { %v427_v61 = vmax.f32 %v403_v59, 0.0  ;;  %1107 = vmatprep.mubr.f32.mxu0 %v426_v58 }
 0x1f6   :  { %1108 = vmatmul.mubr.f32.gmra.mrb[28].mxu0 %v427_v61 }
 0x1f7   :  { %1110 = vmatprep.mubr.f32.mxu0 %v428_v62 }
 0x1fa   :  { %1111 = vmatmul.mubr.f32.gmra.mrb[30].mxu0 %v429_v63 }
 0x1fb   :  { %1129 = vmatprep.mubr.bf16.mxu0 %v1387_v22 }
 0x2b1   :  { %v1091_v0 = vpop.f32.mrb[16].mxu0 }
 0x2b2   :  { %v512_v2 = vpop.f32.mrb[17].mxu0 }
 0x2b3   :  { %v591_v8 = vpack.c.bf16 %v1091_v0, %v512_v2 }
 0x2b5   :  { %v1094_v9 = vpop.f32.mrb[18].mxu0  ;;  %1113 = vmatprep.subr.bf16.mxu0 %v591_v8  ;;  %1185 = vmatprep.subr.bf16.mxu1 %v591_v8 }
 0x2b6   :  { %v522_v10 = vpop.f32.mrb[19].mxu0  ;;  %1114 = vmatpush3.bf16.msra.mxu0 %v591_v8  ;;  %1193 = vmatpush3.bf16.msra.mxu1 %v591_v8 }
 0x2b7   :  { %v592_v11 = vpack.c.bf16 %v1094_v9, %v522_v10 }
 0x2b9   :  { %v1097_v12 = vpop.f32.mrb[20].mxu0  ;;  %1115 = vmatprep.subr.bf16.mxu0 %v592_v11  ;;  %1186 = vmatprep.subr.bf16.mxu1 %v592_v11 }
 0x2ba   :  { %v532_v13 = vpop.f32.mrb[21].mxu0  ;;  %1116 = vmatpush3.bf16.msra.mxu0 %v592_v11  ;;  %1194 = vmatpush3.bf16.msra.mxu1 %v592_v11 }
 0x2bb   :  { %v593_v14 = vpack.c.bf16 %v1097_v12, %v532_v13 }
 0x2bd   :  { %v1100_v15 = vpop.f32.mrb[22].mxu0  ;;  %1117 = vmatprep.subr.bf16.mxu0 %v593_v14  ;;  %1187 = vmatprep.subr.bf16.mxu1 %v593_v14 }
 0x2be   :  { %v542_v22 = vpop.f32.mrb[23].mxu0  ;;  %1118 = vmatpush3.bf16.msra.mxu0 %v593_v14  ;;  %1195 = vmatpush3.bf16.msra.mxu1 %v593_v14 }
 0x2bf   :  { %v594_v16 = vpack.c.bf16 %v1100_v15, %v542_v22 }
 0x2c1   :  { %v1103_v17 = vpop.f32.mrb[24].mxu0  ;;  %1119 = vmatprep.subr.bf16.mxu0 %v594_v16  ;;  %1188 = vmatprep.subr.bf16.mxu1 %v594_v16 }
 0x2c2   :  { %v552_v18 = vpop.f32.mrb[25].mxu0  ;;  %1120 = vmatpush3.bf16.msra.mxu0 %v594_v16  ;;  %1196 = vmatpush3.bf16.msra.mxu1 %v594_v16 }
 0x2c3   :  { %v595_v19 = vpack.c.bf16 %v1103_v17, %v552_v18 }
 0x2c5   :  { %v1106_v20 = vpop.f32.mrb[26].mxu0  ;;  %1121 = vmatprep.subr.bf16.mxu0 %v595_v19  ;;  %1189 = vmatprep.subr.bf16.mxu1 %v595_v19 }
 0x2c6   :  { %v562_v21 = vpop.f32.mrb[27].mxu0  ;;  %1122 = vmatpush3.bf16.msra.mxu0 %v595_v19  ;;  %1197 = vmatpush3.bf16.msra.mxu1 %v595_v19 }
 0x2c7   :  { %v596_v23 = vpack.c.bf16 %v1106_v20, %v562_v21 }
 0x2c9   :  { %v1109_v24 = vpop.f32.mrb[28].mxu0  ;;  %1123 = vmatprep.subr.bf16.mxu0 %v596_v23  ;;  %1190 = vmatprep.subr.bf16.mxu1 %v596_v23 }
 0x2ca   :  { %v572_v25 = vpop.f32.mrb[29].mxu0  ;;  %1124 = vmatpush3.bf16.msra.mxu0 %v596_v23  ;;  %1198 = vmatpush3.bf16.msra.mxu1 %v596_v23 }
 0x2cb   :  { %v597_v26 = vpack.c.bf16 %v1109_v24, %v572_v25 }
 0x2cd   :  { %v1112_v27 = vpop.f32.mrb[30].mxu0  ;;  %1125 = vmatprep.subr.bf16.mxu0 %v597_v26  ;;  %1191 = vmatprep.subr.bf16.mxu1 %v597_v26 }
 0x2ce   :  { %v582_v28 = vpop.f32.mrb[31].mxu0  ;;  %1126 = vmatpush3.bf16.msra.mxu0 %v597_v26  ;;  %1199 = vmatpush3.bf16.msra.mxu1 %v597_v26 }
 0x2cf   :  { %v598_v29 = vpack.c.bf16 %v1112_v27, %v582_v28 }
 0x2d1   :  { %1127 = vmatprep.subr.bf16.mxu0 %v598_v29  ;;  %1192 = vmatprep.subr.bf16.mxu1 %v598_v29 }
 0x2d2   :  { %1128 = vmatpush3.bf16.msra.mxu0 %v598_v29  ;;  %1200 = vmatpush3.bf16.msra.mxu1 %v598_v29 }
 0x2d5   :  { %1130 = vmatmul.mubr.bf16.vlgmr.msra.gmra.mrb[32].mxu0 %v1429_v1  ;;  %1134 = vmatmul.mubr.bf16.vlgmr.msra.gmra.mrb[16].mxu1 %v1438_v3 }
 0x2d6   :  { %1137 = vmatprep.mubr.bf16.mxu1 %v1443_v4 }
 0x2dd   :  { %1138 = vmatmul.mubr.bf16.gmra.mrb[20].mxu1 %v1450_v5 }
 0x2de   :  { %1141 = vmatprep.mubr.bf16.mxu1 %v1455_v6 }
 0x2e5   :  { %1142 = vmatmul.mubr.bf16.gmra.mrb[24].mxu1 %v1462_v7 }
 0x3a8   :  { %v1131_v31 = vpop.f32.mrb[32].mxu0  ;;  %v1135_v32 = vpop.f32.mrb[16].mxu1 }
 0x3a9   :  { %v649_v33 = vadd.f32 %v1131_v31, %v908_v30  ;;  %v665_v34 = vadd.f32 %v1135_v32, %v908_v30  ;;  %v640_v35 = vpop.f32.mrb[33].mxu0  ;;  %v656_v1 = vpop.f32.mrb[17].mxu1 }
 0x3aa   :  { %v1132_v36 = vpop.f32.mrb[34].mxu0  ;;  %v1136_v3 = vpop.f32.mrb[18].mxu1  ;;  %v641_v37 = vadd.f32 %v908_v30, %v640_v35  ;;  %v657_v38 = vadd.f32 %v908_v30, %v656_v1 }
 0x3ab   :  { %715 = vmax.xlane.f32.xlu0 %v665_v34  ;;  %v659_v4 = vpop.f32.mrb[19].mxu1  ;;  %707 = vmax.xlane.f32.xlu1 %v649_v33  ;;  %v643_v5 = vpop.f32.mrb[35].mxu0  ;;  %v652_v6 = vadd.f32 %v1132_v36, %v908_v30  ;;  %v668_v39 = vadd.f32 %v1136_v3, %v908_v30 }
 0x3ac   :  { %v660_v43 = vadd.f32 %v908_v30, %v659_v4  ;;  %v644_v44 = vadd.f32 %v908_v30, %v643_v5 }
 0x3af   :  { %709 = vmax.xlane.f32.xlu1 %v652_v6  ;;  %703 = vmax.xlane.f32.xlu0 %v641_v37 }
 0x3b0   :  { %v1139_v7 = vpop.f32.mrb[20].mxu1 }
 0x3b1   :  { %v672_v40 = vpop.f32.mrb[21].mxu1  ;;  %v681_v45 = vadd.f32 %v1139_v7, %v908_v30 }
 0x3b2   :  { %v1140_v41 = vpop.f32.mrb[22].mxu1  ;;  %v673_v51 = vadd.f32 %v908_v30, %v672_v40 }
 0x3b3   :  { %717 = vmax.xlane.f32.xlu1 %v668_v39  ;;  %711 = vmax.xlane.f32.xlu0 %v657_v38  ;;  %v675_v42 = vpop.f32.mrb[23].mxu1  ;;  %v684_v46 = vadd.f32 %v1140_v41, %v908_v30 }
 0x3b4   :  { %v676_v52 = vadd.f32 %v908_v30, %v675_v42 }
 0x3b7   :  { %713 = vmax.xlane.f32.xlu1 %v660_v43  ;;  %705 = vmax.xlane.f32.xlu0 %v644_v44 }
 0x3b8   :  { %v1143_v47 = vpop.f32.mrb[24].mxu1 }
 0x3b9   :  { %v688_v48 = vpop.f32.mrb[25].mxu1  ;;  %v1496_v55 = vadd.f32 %v1143_v47, %v908_v30 }
 0x3ba   :  { %v1144_v49 = vpop.f32.mrb[26].mxu1  ;;  %v1490_v53 = vadd.f32 %v908_v30, %v688_v48 }
 0x3bb   :  { %725 = vmax.xlane.f32.xlu1 %v684_v46  ;;  %723 = vmax.xlane.f32.xlu0 %v681_v45  ;;  %v691_v50 = vpop.f32.mrb[27].mxu1  ;;  %v1498_v56 = vadd.f32 %v1144_v49, %v908_v30 }
 0x3bc   :  { %v1492_v54 = vadd.f32 %v908_v30, %v691_v50 }
 0x3bf   :  { %721 = vmax.xlane.f32.xlu1 %v676_v52  ;;  %719 = vmax.xlane.f32.xlu0 %v673_v51 }
 0x3c3   :  { %729 = vmax.xlane.f32.xlu1 %v1492_v54  ;;  %727 = vmax.xlane.f32.xlu0 %v1490_v53 }
 0x3c7   :  { %733 = vmax.xlane.f32.xlu1 %v1498_v56  ;;  %731 = vmax.xlane.f32.xlu0 %v1496_v55 }
 0x438   :  { %v716_v57 = vpop.xlane.xlu0 %715  ;;  %v708_v58 = vpop.xlane.xlu1 %707 }
 0x439   :  { %v1502_v59 = vsub.f32 %v649_v33, %v708_v58  ;;  %v1504_v60 = vsub.f32 %v665_v34, %v716_v57 }
 0x43b   :  { %v755_v61 = vmul.f32 1.442695, %v1502_v59  ;;  %v763_v2 = vmul.f32 1.442695, %v1504_v60 }
 0x43c   :  { %v710_v62 = vpop.xlane.xlu1 %709  ;;  %v704_v63 = vpop.xlane.xlu0 %703 }
 0x43d   :  { %v1507_v0 = vsub.f32 %v652_v6, %v710_v62  ;;  %1209 = vpow2.f32 %v755_v61  ;;  %v1510_v8 = vsub.f32 %v641_v37, %v704_v63 }
 0x43f   :  { %v757_v9 = vmul.f32 1.442695, %v1507_v0  ;;  %v751_v14 = vmul.f32 1.442695, %v1510_v8 }
 0x440   :  { %v718_v10 = vpop.xlane.xlu1 %717  ;;  %v712_v11 = vpop.xlane.xlu0 %711 }
 0x441   :  { %1211 = vpow2.f32 %v757_v9  ;;  %v1513_v12 = vsub.f32 %v668_v39, %v718_v10  ;;  %v1515_v13 = vsub.f32 %v657_v38, %v712_v11 }
 0x442   :  { %1213 = vpow2.f32 %v763_v2 }
 0x443   :  { %v765_v15 = vmul.f32 1.442695, %v1513_v12  ;;  %v759_v17 = vmul.f32 1.442695, %v1515_v13 }
 0x444   :  { %v714_v22 = vpop.xlane.xlu1 %713  ;;  %v706_v16 = vpop.xlane.xlu0 %705 }
 0x445   :  { %1215 = vpow2.f32 %v765_v15  ;;  %v1520_v18 = vsub.f32 %v660_v43, %v714_v22  ;;  %v1522_v19 = vsub.f32 %v644_v44, %v706_v16 }
 0x446   :  { %1217 = vpow2.f32 %v751_v14 }
 0x447   :  { %v753_v20 = vmul.f32 1.442695, %v1522_v19  ;;  %v1210_v21 = vpop.eup %1209  ;;  %1219 = vpow2.f32 %v759_v17  ;;  %v761_v25 = vmul.f32 1.442695, %v1520_v18 }
 0x448   :  { %v726_v23 = vpop.xlane.xlu1 %725  ;;  %v724_v24 = vpop.xlane.xlu0 %723  ;;  %787 = vadd.xlane.f32.xlu0 %v1210_v21 }
 0x449   :  { %v1526_v26 = vsub.f32 %v684_v46, %v726_v23  ;;  %v1528_v27 = vsub.f32 %v681_v45, %v724_v24  ;;  %1221 = vpow2.f32 %v753_v20 }
 0x44a   :  { %1223 = vpow2.f32 %v761_v25 }
 0x44b   :  { %v1212_v28 = vpop.eup %1211  ;;  %v771_v29 = vmul.f32 1.442695, %v1528_v27  ;;  %v773_v33 = vmul.f32 1.442695, %v1526_v26 }
 0x44c   :  { %v1214_v30 = vpop.eup %1213  ;;  %789 = vadd.xlane.f32.xlu1 %v1212_v28  ;;  %v722_v31 = vpop.xlane.xlu1 %721 }
 0x44d   :  { %v720_v32 = vpop.xlane.xlu0 %719  ;;  %v1532_v34 = vsub.f32 %v676_v52, %v722_v31  ;;  %795 = vadd.xlane.f32.xlu0 %v1214_v30  ;;  %1225 = vpow2.f32 %v771_v29 }
 0x44e   :  { %v1534_v35 = vsub.f32 %v673_v51, %v720_v32  ;;  %1227 = vpow2.f32 %v773_v33 }
 0x44f   :  { %v1216_v1 = vpop.eup %1215  ;;  %v769_v37 = vmul.f32 1.442695, %v1532_v34 }
 0x450   :  { %v767_v36 = vmul.f32 1.442695, %v1534_v35  ;;  %v1218_v3 = vpop.eup %1217  ;;  %797 = vadd.xlane.f32.xlu1 %v1216_v1  ;;  %v730_v4 = vpop.xlane.xlu1 %729 }
 0x451   :  { %v728_v5 = vpop.xlane.xlu0 %727  ;;  %v1539_v6 = vsub.f32 %v1492_v54, %v730_v4  ;;  %783 = vadd.xlane.f32.xlu0 %v1218_v3  ;;  %v1220_v38 = vpop.eup %1219 }
 0x452   :  { %v1542_v7 = vsub.f32 %v1490_v53, %v728_v5  ;;  %1229 = vpow2.f32 %v767_v36 }
 0x453   :  { %v1222_v40 = vpop.eup %1221  ;;  %1231 = vpow2.f32 %v769_v37  ;;  %v777_v43 = vmul.f32 1.442695, %v1539_v6 }
 0x454   :  { %v775_v39 = vmul.f32 1.442695, %v1542_v7  ;;  %v734_v41 = vpop.xlane.xlu1 %733  ;;  %785 = vadd.xlane.f32.xlu1 %v1222_v40  ;;  %v1224_v46 = vpop.eup %1223 }
 0x455   :  { %v732_v42 = vpop.xlane.xlu0 %731  ;;  %791 = vadd.xlane.f32.xlu0 %v1220_v38  ;;  %v1550_v45 = vsub.f32 %v1498_v56, %v734_v41 }
 0x456   :  { %v1547_v44 = vsub.f32 %v1496_v55, %v732_v42  ;;  %1233 = vpow2.f32 %v775_v39 }
 0x457   :  { %v1226_v48 = vpop.eup %1225  ;;  %1235 = vpow2.f32 %v777_v43  ;;  %v781_v49 = vmul.f32 1.442695, %v1550_v45 }
 0x458   :  { %v779_v47 = vmul.f32 1.442695, %v1547_v44  ;;  %793 = vadd.xlane.f32.xlu1 %v1224_v46  ;;  %v1228_v50 = vpop.eup %1227 }
 0x459   :  { %803 = vadd.xlane.f32.xlu0 %v1226_v48 }
 0x45a   :  { %1237 = vpow2.f32 %v779_v47 }
 0x45b   :  { %1239 = vpow2.f32 %v781_v49 }
 0x45c   :  { %v1230_v51 = vpop.eup %1229  ;;  %805 = vadd.xlane.f32.xlu1 %v1228_v50 }
 0x45d   :  { %799 = vadd.xlane.f32.xlu0 %v1230_v51  ;;  %v1232_v52 = vpop.eup %1231 }
 0x460   :  { %v1234_v53 = vpop.eup %1233  ;;  %801 = vadd.xlane.f32.xlu1 %v1232_v52 }
 0x461   :  { %807 = vadd.xlane.f32.xlu0 %v1234_v53  ;;  %v1236_v54 = vpop.eup %1235 }
 0x464   :  { %v1238_v55 = vpop.eup %1237  ;;  %809 = vadd.xlane.f32.xlu1 %v1236_v54 }
 0x465   :  { %811 = vadd.xlane.f32.xlu0 %v1238_v55  ;;  %v1240_v56 = vpop.eup %1239 }
 0x468   :  { %813 = vadd.xlane.f32.xlu1 %v1240_v56 }
 0x4d5   :  { %v788_v57 = vpop.xlane.xlu0 %787 }
 0x4d6   :  { %1241 = vlog2.f32 %v788_v57 }
 0x4d9   :  { %v790_v58 = vpop.xlane.xlu1 %789 }
 0x4da   :  { %1243 = vlog2.f32 %v790_v58  ;;  %v796_v61 = vpop.xlane.xlu0 %795 }
 0x4db   :  { %1245 = vlog2.f32 %v796_v61 }
 0x4dd   :  { %v798_v62 = vpop.xlane.xlu1 %797 }
 0x4de   :  { %1247 = vlog2.f32 %v798_v62  ;;  %v784_v63 = vpop.xlane.xlu0 %783 }
 0x4df   :  { %1249 = vlog2.f32 %v784_v63 }
 0x4e0   :  { %v1242_v2 = vpop.eup %1241 }
 0x4e1   :  { %v820_v9 = vmul.f32 0.6931472, %v1242_v2  ;;  %v786_v10 = vpop.xlane.xlu1 %785 }
 0x4e2   :  { %v792_v11 = vpop.xlane.xlu0 %791  ;;  %1251 = vlog2.f32 %v786_v10 }
 0x4e3   :  { %v849_v15 = vsub.f32 %v1502_v59, %v820_v9  ;;  %1253 = vlog2.f32 %v792_v11 }
 0x4e4   :  { %v1244_v14 = vpop.eup %1243 }
 0x4e5   :  { %v1246_v22 = vpop.eup %1245  ;;  %v822_v16 = vmul.f32 0.6931472, %v1244_v14  ;;  %865 = vst [vmem:[%s1624_s6 + $0x10] sm:$0xff] %v849_v15  ;;  %v794_v20 = vpop.xlane.xlu1 %793 }
 0x4e6   :  { %v828_v17 = vmul.f32 0.6931472, %v1246_v22  ;;  %v804_v21 = vpop.xlane.xlu0 %803  ;;  %1255 = vlog2.f32 %v794_v20 }
 0x4e7   :  { %v850_v23 = vsub.f32 %v1507_v0, %v822_v16  ;;  %1257 = vlog2.f32 %v804_v21 }
 0x4e8   :  { %v1248_v24 = vpop.eup %1247  ;;  %v853_v25 = vsub.f32 %v1504_v60, %v828_v17 }
 0x4e9   :  { %v1250_v28 = vpop.eup %1249  ;;  %866 = vst [vmem:[%s1624_s6 + $0x18] sm:$0xff] %v850_v23  ;;  %v830_v59 = vmul.f32 0.6931472, %v1248_v24  ;;  %v806_v30 = vpop.xlane.xlu1 %805 }
 0x4ea   :  { %869 = vst [vmem:[%s1624_s6 + $0x30] sm:$0xff] %v853_v25  ;;  %v816_v29 = vmul.f32 0.6931472, %v1250_v28  ;;  %v800_v31 = vpop.xlane.xlu0 %799  ;;  %1259 = vlog2.f32 %v806_v30 }
 0x4eb   :  { %v854_v0 = vsub.f32 %v1513_v12, %v830_v59  ;;  %1261 = vlog2.f32 %v800_v31 }
 0x4ec   :  { %v847_v32 = vsub.f32 %v1510_v8, %v816_v29  ;;  %v1252_v60 = vpop.eup %1251 }
 0x4ed   :  { %870 = vst [vmem:[%s1624_s6 + $0x38] sm:$0xff] %v854_v0  ;;  %v1254_v33 = vpop.eup %1253  ;;  %v818_v1 = vmul.f32 0.6931472, %v1252_v60  ;;  %v802_v36 = vpop.xlane.xlu1 %801 }
 0x4ee   :  { %863 = vst [vmem:[%s1624_s6] sm:$0xff] %v847_v32  ;;  %v808_v3 = vpop.xlane.xlu0 %807  ;;  %v824_v4 = vmul.f32 0.6931472, %v1254_v33  ;;  %1263 = vlog2.f32 %v802_v36 }
 0x4ef   :  { %v848_v12 = vsub.f32 %v1522_v19, %v818_v1  ;;  %1265 = vlog2.f32 %v808_v3 }
 0x4f0   :  { %v1256_v8 = vpop.eup %1255  ;;  %v851_v5 = vsub.f32 %v1515_v13, %v824_v4 }
 0x4f1   :  { %v1258_v37 = vpop.eup %1257  ;;  %864 = vst [vmem:[%s1624_s6 + $0x8] sm:$0xff] %v848_v12  ;;  %v826_v38 = vmul.f32 0.6931472, %v1256_v8  ;;  %v810_v39 = vpop.xlane.xlu1 %809 }
 0x4f2   :  { %v812_v40 = vpop.xlane.xlu0 %811  ;;  %867 = vst [vmem:[%s1624_s6 + $0x20] sm:$0xff] %v851_v5  ;;  %v836_v41 = vmul.f32 0.6931472, %v1258_v37  ;;  %1267 = vlog2.f32 %v810_v39 }
 0x4f3   :  { %v852_v19 = vsub.f32 %v1520_v18, %v826_v38  ;;  %1269 = vlog2.f32 %v812_v40 }
 0x4f4   :  { %v1260_v42 = vpop.eup %1259  ;;  %v857_v13 = vsub.f32 %v1528_v27, %v836_v41 }
 0x4f5   :  { %v1262_v43 = vpop.eup %1261  ;;  %868 = vst [vmem:[%s1624_s6 + $0x28] sm:$0xff] %v852_v19  ;;  %v838_v46 = vmul.f32 0.6931472, %v1260_v42  ;;  %v814_v47 = vpop.xlane.xlu1 %813 }
 0x4f6   :  { %873 = vst [vmem:[%s1624_s6 + $0x50] sm:$0xff] %v857_v13  ;;  %v832_v48 = vmul.f32 0.6931472, %v1262_v43  ;;  %1271 = vlog2.f32 %v814_v47 }
 0x4f7   :  { %v858_v49 = vsub.f32 %v1526_v26, %v838_v46 }
 0x4f8   :  { %v1264_v18 = vpop.eup %1263  ;;  %v855_v50 = vsub.f32 %v1534_v35, %v832_v48 }
 0x4f9   :  { %v1266_v51 = vpop.eup %1265  ;;  %874 = vst [vmem:[%s1624_s6 + $0x58] sm:$0xff] %v858_v49  ;;  %v834_v27 = vmul.f32 0.6931472, %v1264_v18 }
 0x4fa   :  { %871 = vst [vmem:[%s1624_s6 + $0x40] sm:$0xff] %v855_v50  ;;  %v840_v52 = vmul.f32 0.6931472, %v1266_v51 }
 0x4fb   :  { %v856_v53 = vsub.f32 %v1532_v34, %v834_v27 }
 0x4fc   :  { %v1268_v54 = vpop.eup %1267  ;;  %v859_v55 = vsub.f32 %v1542_v7, %v840_v52 }
 0x4fd   :  { %v1270_v26 = vpop.eup %1269  ;;  %872 = vst [vmem:[%s1624_s6 + $0x48] sm:$0xff] %v856_v53  ;;  %v842_v35 = vmul.f32 0.6931472, %v1268_v54 }
 0x4fe   :  { %875 = vst [vmem:[%s1624_s6 + $0x60] sm:$0xff] %v859_v55  ;;  %v844_v56 = vmul.f32 0.6931472, %v1270_v26 }
 0x4ff   :  { %v860_v57 = vsub.f32 %v1539_v6, %v842_v35 }
 0x500   :  { %v1272_v58 = vpop.eup %1271  ;;  %v861_v61 = vsub.f32 %v1547_v44, %v844_v56 }
 0x501   :  { %876 = vst [vmem:[%s1624_s6 + $0x68] sm:$0xff] %v860_v57  ;;  %v846_v34 = vmul.f32 0.6931472, %v1272_v58 }
 0x502   :  { %877 = vst [vmem:[%s1624_s6 + $0x70] sm:$0xff] %v861_v61 }
 0x503   :  { %v862_v7 = vsub.f32 %v1550_v45, %v846_v34 }
 0x505   :  { %878 = vst [vmem:[%s1624_s6 + $0x78] sm:$0xff] %v862_v7 }

</bundles_post_ra>
